<compile_context>
chip_gen: v6e
topology: v6e:2x2x1
jax: 0.10.0
libtpu: 0.0.40
codegen_flags: <defaults>
</compile_context>

<pallas_src>
import math

import jax
import jax.numpy as jnp
from jax.experimental import pallas as pl
from jax.experimental.pallas import tpu as pltpu


# ----------------------------- helpers --------------------------------------
def _cdiv(a, b):
    return -(-a // b)


def _round_up(a, m):
    return _cdiv(a, m) * m


def _choose_tile(dim, cap, granule):
    """Balanced, granule-aligned tile: minimal padding instead of min(dim,cap)."""
    dim_g = _round_up(max(dim, 1), granule)
    cap_g = max(granule, (cap // granule) * granule)
    n = _cdiv(dim_g, cap_g)
    tile = _round_up(_cdiv(dim_g, n), granule)
    return tile, tile * n                      # (tile, padded dim)


def _pick_divisor_tile(dim_p, cap, granule=128):
    """Largest granule-aligned divisor of dim_p that is <= cap."""
    max_n = max(1, dim_p // granule)
    for n in range(1, max_n + 1):
        if dim_p % n == 0:
            t = dim_p // n
            if t % granule == 0 and t <= cap:
                return t
    return granule


def _vmem_capacity_bytes():
    try:
        return int(pltpu.get_tpu_info().vmem_capacity_bytes)
    except Exception:
        return 64 * 1024 * 1024                # conservative (v7x-sized) fallback


def _default_vmem_limit_bytes():
    return int(_vmem_capacity_bytes() * 3 // 4)


# ----------------------------- kernels --------------------------------------
def _lstm_fused_kernel(z_ref, w_ref, b_ref, c_prev_ref, h_out_ref, c_out_ref):
    """VMEM-resident path.  Grid = (batch tiles,).

    z_ref      : (tm, K_p)        activations [x | h_prev]
    w_ref      : (K_p, 4*H_p)     fused weights, gate-blocked columns [i|f|g|o]
    b_ref      : (1, 4*H_p) f32   fused bias (b_ih + b_hh)
    c_prev_ref : (tm, H_p)
    h_out_ref  : (tm, H_p)
    c_out_ref  : (tm, H_p)
    """
    hp = c_prev_ref.shape[-1]
    # One MXU contraction per step (single push/drain instead of 4).
    gates = jnp.dot(z_ref[...], w_ref[...], preferred_element_type=jnp.float32)
    gates = gates + b_ref[...]

    c_prev = c_prev_ref[...].astype(jnp.float32)
    # Consume the gates one at a time to keep the f32 live set small.
    c_new = jax.nn.sigmoid(gates[:, hp:2 * hp]) * c_prev                       # forget
    c_new = c_new + jax.nn.sigmoid(gates[:, :hp]) * jnp.tanh(gates[:, 2 * hp:3 * hp])
    h_new = jax.nn.sigmoid(gates[:, 3 * hp:]) * jnp.tanh(c_new)                # output
    c_out_ref[...] = c_new.astype(c_out_ref.dtype)
    h_out_ref[...] = h_new.astype(h_out_ref.dtype)


def _lstm_tiled_kernel(z_ref, w_ref, b_ref, c_prev_ref, h_out_ref, c_out_ref,
                       acc_ref):
    """Tiled fallback path.  Grid = (batch tiles, hidden tiles, K tiles); K innermost.

    z_ref      : (tm, tk)
    w_ref      : (4, tk, tn)      gate-major fused weights tile
    b_ref      : (4, 1, tn) f32
    c_prev_ref : (tm, tn)
    acc_ref    : (4, tm, tn) f32  VMEM accumulator scratch
    """
    k = pl.program_id(2)

    @pl.when(k == 0)
    def _():
        # Seed with the fused bias (removes the epilogue bias adds).
        acc_ref[...] = jnp.zeros(acc_ref.shape, jnp.float32) + b_ref[...]

    z = z_ref[...]
    for g in range(4):
        acc_ref[g] += jnp.dot(z, w_ref[g], preferred_element_type=jnp.float32)

    @pl.when(k == pl.num_programs(2) - 1)
    def _():
        # torch.chunk(4, dim=1) order: input, forget, cell, output
        c_prev = c_prev_ref[...].astype(jnp.float32)
        c_new = jax.nn.sigmoid(acc_ref[1]) * c_prev
        c_new = c_new + jax.nn.sigmoid(acc_ref[0]) * jnp.tanh(acc_ref[2])
        h_new = jax.nn.sigmoid(acc_ref[3]) * jnp.tanh(c_new)
        c_out_ref[...] = c_new.astype(c_out_ref.dtype)
        h_out_ref[...] = h_new.astype(h_out_ref.dtype)


# ----------------------------- packing --------------------------------------
def pack_lstm_params(w_ih, w_hh, b_ih, b_hh, *, param_dtype=jnp.bfloat16,
                     tn_cap=512, tk_cap=512, force_tiled=False,
                     vmem_budget_bytes=None):
    """One-time weight/bias packing.  Call once; reuse across steps / scan."""
    in_size, four_h = w_ih.shape
    H = four_h // 4
    K = in_size + H
    dtype = jnp.dtype(param_dtype if param_dtype is not None else w_ih.dtype)

    # Fused contraction: z = [x | h_prev] (B, K),  W = [W_ih ; W_hh] (K, 4, H).
    w = jnp.concatenate([w_ih, w_hh], axis=0).reshape(K, 4, H).astype(dtype)
    b = (b_ih.astype(jnp.float32) + b_hh.astype(jnp.float32)).reshape(4, H)

    # Decide whether the whole weight can live in VMEM (resident fast path).
    K_pr = _round_up(K, 128)
    H_pr = _round_up(H, 128)
    itemsize = dtype.itemsize
    if vmem_budget_bytes is None:
        vmem_budget_bytes = _default_vmem_limit_bytes()
    tm_hint = 256
    est = (2 * K_pr * 4 * H_pr * itemsize          # weights (possibly double-buffered)
           + 2 * tm_hint * K_pr * itemsize         # z (double-buffered)
           + 6 * tm_hint * H_pr * 4                # c_prev + h_out + c_out (x2)
           + tm_hint * 4 * H_pr * 4                # f32 gates temporary
           + 2 * 4 * H_pr * 4)                     # bias
    resident = (not force_tiled) and est <= vmem_budget_bytes

    if resident:
        # Flat (K_p, 4*H_p); columns are gate-blocked and lane-aligned (H_p % 128 == 0).
        w_p = jnp.pad(w, ((0, K_pr - K), (0, 0), (0, H_pr - H)))
        w_p = w_p.reshape(K_pr, 4 * H_pr)
        b_p = jnp.pad(b, ((0, 0), (0, H_pr - H))).reshape(1, 4 * H_pr)
    else:
        # Gate-major (4, K_p, H_p) with balanced padding for the tiled grid.
        _, K_pt = _choose_tile(K, tk_cap, 128)
        _, H_pt = _choose_tile(H, tn_cap, 128)
        w_p = jnp.pad(w.transpose(1, 0, 2),
                      ((0, 0), (0, K_pt - K), (0, H_pt - H)))
        b_p = jnp.pad(b, ((0, 0), (0, H_pt - H))).reshape(4, 1, H_pt)

    return w_p, b_p


# ----------------------------- wrappers --------------------------------------
def lstm_cell_packed(x, h_prev, c_prev, w_packed, b_packed, *,
                     tm_cap=256, tn_cap=512, tk_cap=512, vmem_limit_bytes=None):
    """One LSTMCell step using pre-packed parameters (PyTorch forward semantics)."""
    B, in_size = x.shape
    H = h_prev.shape[1]
    K = in_size + H
    out_dtype = h_prev.dtype                 # keep state dtype (f32 for scans)
    comp_dtype = w_packed.dtype
    resident = (w_packed.ndim == 2)

    if resident:
        K_p, four_h_p = w_packed.shape
        H_p = four_h_p // 4
    else:
        _, K_p, H_p = w_packed.shape

    if vmem_limit_bytes is None:
        vmem_limit_bytes = _default_vmem_limit_bytes()

    # Batch tile: bf16 packs 2 rows per sublane -> use 16-row granules.
    row_granule = 16 if jnp.dtype(comp_dtype).itemsize == 2 else 8
    tm, B_p = _choose_tile(B, tm_cap, row_granule)

    # Per-step activation packing (cheap vs. weights; weights are NOT repacked).
    z = jnp.concatenate([x, h_prev], axis=1).astype(comp_dtype)
    z_p = jnp.pad(z, ((0, B_p - B), (0, K_p - K)))
    c_p = jnp.pad(c_prev, ((0, B_p - B), (0, H_p - H)))

    out_shape = (jax.ShapeDtypeStruct((B_p, H_p), out_dtype),
                 jax.ShapeDtypeStruct((B_p, H_p), out_dtype))

    if resident:
        grid = (B_p // tm,)
        h_pad, c_pad = pl.pallas_call(
            _lstm_fused_kernel,
            out_shape=out_shape,
            grid_spec=pltpu.PrefetchScalarGridSpec(
                num_scalar_prefetch=0,
                grid=grid,
                in_specs=[
                    pl.BlockSpec((tm, K_p), lambda i: (i, 0)),        # z
                    pl.BlockSpec((K_p, 4 * H_p), lambda i: (0, 0)),   # W (resident)
                    pl.BlockSpec((1, 4 * H_p), lambda i: (0, 0)),     # bias
                    pl.BlockSpec((tm, H_p), lambda i: (i, 0)),        # c_prev
                ],
                out_specs=[
                    pl.BlockSpec((tm, H_p), lambda i: (i, 0)),        # h_out
                    pl.BlockSpec((tm, H_p), lambda i: (i, 0)),        # c_out
                ],
            ),
            compiler_params=pltpu.CompilerParams(
                dimension_semantics=("parallel",),
                vmem_limit_bytes=int(vmem_limit_bytes),
            ),
        )(z_p, w_packed, b_packed, c_p)
    else:
        tn = _pick_divisor_tile(H_p, tn_cap)
        tk = _pick_divisor_tile(K_p, tk_cap)
        grid = (B_p // tm, H_p // tn, K_p // tk)
        h_pad, c_pad = pl.pallas_call(
            _lstm_tiled_kernel,
            out_shape=out_shape,
            grid_spec=pltpu.PrefetchScalarGridSpec(
                num_scalar_prefetch=0,
                grid=grid,
                in_specs=[
                    pl.BlockSpec((tm, tk), lambda i, j, k: (i, k)),        # z
                    pl.BlockSpec((4, tk, tn), lambda i, j, k: (0, k, j)),  # W
                    pl.BlockSpec((4, 1, tn), lambda i, j, k: (0, 0, j)),   # bias
                    pl.BlockSpec((tm, tn), lambda i, j, k: (i, j)),        # c_prev
                ],
                out_specs=[
                    pl.BlockSpec((tm, tn), lambda i, j, k: (i, j)),        # h_out
                    pl.BlockSpec((tm, tn), lambda i, j, k: (i, j)),        # c_out
                ],
                scratch_shapes=[pltpu.VMEM((4, tm, tn), jnp.float32)],
            ),
            compiler_params=pltpu.CompilerParams(
                dimension_semantics=("parallel", "parallel", "arbitrary"),
                vmem_limit_bytes=int(vmem_limit_bytes),
            ),
        )(z_p, w_packed, b_packed, c_p)

    return h_pad[:B, :H], c_pad[:B, :H]


def lstm_cell(x, h_prev, c_prev, w_ih, w_hh, b_ih, b_hh, *,
              param_dtype=jnp.bfloat16, tm_cap=256, tn_cap=512, tk_cap=512):
    """Convenience one-shot wrapper.  For sequences, pack once and reuse."""
    w_p, b_p = pack_lstm_params(w_ih, w_hh, b_ih, b_hh, param_dtype=param_dtype,
                                tn_cap=tn_cap, tk_cap=tk_cap)
    return lstm_cell_packed(x, h_prev, c_prev, w_p, b_p,
                            tm_cap=tm_cap, tn_cap=tn_cap, tk_cap=tk_cap)


def lstm_sequence(xs, h0, c0, w_packed, b_packed, **kw):
    """Scan the cell over time; packed weights are loop-invariant (packed once)."""
    def step(carry, x_t):
        h, c = carry
        h, c = lstm_cell_packed(x_t, h, c, w_packed, b_packed, **kw)
        return (h, c), h
    (h, c), hs = jax.lax.scan(step, (h0, c0), xs)
    return hs, (h, c)


# ----------------------------- reference & init ------------------------------
def init_lstm_params(key, input_size, hidden_size, dtype=jnp.float32):
    stdv = 1.0 / math.sqrt(hidden_size)
    k1, k2, k3, k4 = jax.random.split(key, 4)
    w_ih = jax.random.uniform(k1, (input_size, 4 * hidden_size), dtype, -stdv, stdv)
    w_hh = jax.random.uniform(k2, (hidden_size, 4 * hidden_size), dtype, -stdv, stdv)
    b_ih = jax.random.uniform(k3, (4 * hidden_size,), dtype, -stdv, stdv)
    b_hh = jax.random.uniform(k4, (4 * hidden_size,), dtype, -stdv, stdv)
    return w_ih, w_hh, b_ih, b_hh


def lstm_cell_ref(x, h_prev, c_prev, w_ih, w_hh, b_ih, b_hh):
    gates = x @ w_ih + b_ih + h_prev @ w_hh + b_hh
    i_g, f_g, g_g, o_g = jnp.split(gates, 4, axis=1)
    c = jax.nn.sigmoid(f_g) * c_prev + jax.nn.sigmoid(i_g) * jnp.tanh(g_g)
    h = jax.nn.sigmoid(o_g) * jnp.tanh(c)
    return h, c


# ----------------------------- tests ------------------------------------------
if __name__ == "__main__":
    B, INPUT, HIDDEN = 8, 16, 32
    key = jax.random.PRNGKey(0)
    k_params, kx, kh, kc, ks = jax.random.split(key, 5)

    w_ih, w_hh, b_ih, b_hh = init_lstm_params(k_params, INPUT, HIDDEN)
    x = jax.random.normal(kx, (B, INPUT), jnp.float32)
    h0 = jax.random.normal(kh, (B, HIDDEN), jnp.float32)
    c0 = jax.random.normal(kc, (B, HIDDEN), jnp.float32)
    h_ref, c_ref = lstm_cell_ref(x, h0, c0, w_ih, w_hh, b_ih, b_hh)

    # --- VMEM-resident fused path, f32 weights: tight check ------------------
    w_f32, b_f32 = pack_lstm_params(w_ih, w_hh, b_ih, b_hh, param_dtype=jnp.float32)
    h1, c1 = lstm_cell_packed(x, h0, c0, w_f32, b_f32)
    jax.block_until_ready((h1, c1))
    assert jnp.allclose(h1, h_ref, atol=1e-5, rtol=1e-5)
    assert jnp.allclose(c1, c_ref, atol=1e-5, rtol=1e-5)

    # --- resident path, default bf16 weights (f32 accumulate + epilogue) -----
    w_bf, b_bf = pack_lstm_params(w_ih, w_hh, b_ih, b_hh)
    h1b, c1b = lstm_cell_packed(x, h0, c0, w_bf, b_bf)
    jax.block_until_ready((h1b, c1b))
    assert jnp.allclose(h1b, h_ref, atol=5e-2, rtol=5e-2)
    assert jnp.allclose(c1b, c_ref, atol=5e-2, rtol=5e-2)

    # --- short sequence: packed weights carried loop-invariant through scan ---
    T = 6
    xs = jax.random.normal(ks, (T, B, INPUT), jnp.float32)
    hs, (hT, cT) = lstm_sequence(xs, h0, c0, w_f32, b_f32)
    jax.block_until_ready(hs)
    h_r, c_r = h0, c0
    for t in range(T):
        h_r, c_r = lstm_cell_ref(xs[t], h_r, c_r, w_ih, w_hh, b_ih, b_hh)
        assert jnp.allclose(hs[t], h_r, atol=1e-4, rtol=1e-4)
    assert jnp.allclose(hT, h_r, atol=1e-4, rtol=1e-4)
    assert jnp.allclose(cT, c_r, atol=1e-4, rtol=1e-4)

    # --- tiled fallback path (forced): multi-block grid + K accumulation ------
    B2, IN2, H2 = 16, 96, 256
    k2 = jax.random.PRNGKey(1)
    kp2, kx2, kh2, kc2 = jax.random.split(k2, 4)
    w_ih2, w_hh2, b_ih2, b_hh2 = init_lstm_params(kp2, IN2, H2)
    x2 = jax.random.normal(kx2, (B2, IN2), jnp.float32)
    h02 = jax.random.normal(kh2, (B2, H2), jnp.float32)
    c02 = jax.random.normal(kc2, (B2, H2), jnp.float32)

    w_t, b_t = pack_lstm_params(w_ih2, w_hh2, b_ih2, b_hh2,
                                param_dtype=jnp.float32,
                                force_tiled=True, tn_cap=128, tk_cap=128)
    h2, c2 = lstm_cell_packed(x2, h02, c02, w_t, b_t,
                              tm_cap=8, tn_cap=128, tk_cap=128)
    jax.block_until_ready((h2, c2))
    h2_ref, c2_ref = lstm_cell_ref(x2, h02, c02, w_ih2, w_hh2, b_ih2, b_hh2)
    assert jnp.allclose(h2, h2_ref, atol=1e-4, rtol=1e-4)
    assert jnp.allclose(c2, c2_ref, atol=1e-4, rtol=1e-4)

    print("KERNEL_OK")
</pallas_src>

<mosaic_0001>
module attributes {stable_mosaic.version = 11 : i64} {
  func.func @_lstm_fused_kernel(%arg0: i32, %arg1: memref<8x128xf32, #tpu.memory_space<vmem>>, %arg2: memref<128x512xf32, #tpu.memory_space<vmem>>, %arg3: memref<1x512xf32, #tpu.memory_space<vmem>>, %arg4: memref<8x128xf32, #tpu.memory_space<vmem>>, %arg5: memref<8x128xf32, #tpu.memory_space<vmem>>, %arg6: memref<8x128xf32, #tpu.memory_space<vmem>>) attributes {dimension_semantics = [#tpu.dimension_semantics<parallel>], iteration_bounds = array<i64: 1>, scalar_prefetch = 0 : i64, scratch_operands = 0 : i64, tpu.core_type = #tpu.core_type<tc>, window_params = [{transform_indices = @transform_0, window_bounds = array<i64: 8, 128>}, {pipeline_mode = #tpu.pipeline_mode<synchronous>, transform_indices = @transform_1, window_bounds = array<i64: 128, 512>}, {pipeline_mode = #tpu.pipeline_mode<synchronous>, transform_indices = @transform_2, window_bounds = array<i64: 1, 512>}, {transform_indices = @transform_3, window_bounds = array<i64: 8, 128>}, {transform_indices = @transform_4, window_bounds = array<i64: 8, 128>}, {transform_indices = @transform_5, window_bounds = array<i64: 8, 128>}]} {
    %c0 = arith.constant 0 : index
    %c0_0 = arith.constant 0 : index
    %0 = vector.load %arg1[%c0, %c0_0] : memref<8x128xf32, #tpu.memory_space<vmem>>, vector<8x128xf32>
    %c0_1 = arith.constant 0 : index
    %c0_2 = arith.constant 0 : index
    %1 = vector.load %arg2[%c0_1, %c0_2] : memref<128x512xf32, #tpu.memory_space<vmem>>, vector<128x512xf32>
    %cst = arith.constant dense<0.000000e+00> : vector<8x512xf32>
    %2 = tpu.matmul %0, %1, %cst {dimension_numbers = #tpu.dot_dimension_numbers<[1], [0], [0], [1], [0, 0, 1, 1], [], []>} : vector<8x128xf32>, vector<128x512xf32>, vector<8x512xf32> -> vector<8x512xf32>
    %c0_3 = arith.constant 0 : index
    %c0_4 = arith.constant 0 : index
    %3 = vector.load %arg3[%c0_3, %c0_4] : memref<1x512xf32, #tpu.memory_space<vmem>>, vector<1x512xf32>
    %4 = vector.broadcast %3 : vector<1x512xf32> to vector<8x512xf32>
    %5 = arith.addf %2, %4 : vector<8x512xf32>
    %c0_5 = arith.constant 0 : index
    %c0_6 = arith.constant 0 : index
    %6 = vector.load %arg4[%c0_5, %c0_6] : memref<8x128xf32, #tpu.memory_space<vmem>>, vector<8x128xf32>
    %7 = vector.extract_strided_slice %5 {offsets = [0, 128], sizes = [8, 128], strides = [1, 1]} : vector<8x512xf32> to vector<8x128xf32>
    %8 = arith.negf %7 : vector<8x128xf32>
    %9 = math.exp %8 : vector<8x128xf32>
    %cst_7 = arith.constant 1.000000e+00 : f32
    %10 = vector.broadcast %cst_7 : f32 to vector<8x128xf32>
    %11 = arith.addf %10, %9 : vector<8x128xf32>
    %12 = arith.divf %10, %11 : vector<8x128xf32>
    %13 = arith.mulf %12, %6 : vector<8x128xf32>
    %14 = vector.extract_strided_slice %5 {offsets = [0, 0], sizes = [8, 128], strides = [1, 1]} : vector<8x512xf32> to vector<8x128xf32>
    %15 = arith.negf %14 : vector<8x128xf32>
    %16 = math.exp %15 : vector<8x128xf32>
    %cst_8 = arith.constant 1.000000e+00 : f32
    %17 = vector.broadcast %cst_8 : f32 to vector<8x128xf32>
    %18 = arith.addf %17, %16 : vector<8x128xf32>
    %19 = arith.divf %17, %18 : vector<8x128xf32>
    %20 = vector.extract_strided_slice %5 {offsets = [0, 256], sizes = [8, 128], strides = [1, 1]} : vector<8x512xf32> to vector<8x128xf32>
    %21 = math.tanh %20 : vector<8x128xf32>
    %22 = arith.mulf %19, %21 : vector<8x128xf32>
    %23 = arith.addf %13, %22 : vector<8x128xf32>
    %24 = vector.extract_strided_slice %5 {offsets = [0, 384], sizes = [8, 128], strides = [1, 1]} : vector<8x512xf32> to vector<8x128xf32>
    %25 = arith.negf %24 : vector<8x128xf32>
    %26 = math.exp %25 : vector<8x128xf32>
    %cst_9 = arith.constant 1.000000e+00 : f32
    %27 = vector.broadcast %cst_9 : f32 to vector<8x128xf32>
    %28 = arith.addf %27, %26 : vector<8x128xf32>
    %29 = arith.divf %27, %28 : vector<8x128xf32>
    %30 = math.tanh %23 : vector<8x128xf32>
    %31 = arith.mulf %29, %30 : vector<8x128xf32>
    %c0_10 = arith.constant 0 : index
    %c0_11 = arith.constant 0 : index
    %32 = vector.load %arg6[%c0_10, %c0_11] : memref<8x128xf32, #tpu.memory_space<vmem>>, vector<8x128xf32>
    tpu.vector_store %arg6[%c0_10, %c0_11], %23 {strides = array<i32>} : memref<8x128xf32, #tpu.memory_space<vmem>>, vector<8x128xf32>,
    %c0_12 = arith.constant 0 : index
    %c0_13 = arith.constant 0 : index
    %33 = vector.load %arg5[%c0_12, %c0_13] : memref<8x128xf32, #tpu.memory_space<vmem>>, vector<8x128xf32>
    tpu.vector_store %arg5[%c0_12, %c0_13], %31 {strides = array<i32>} : memref<8x128xf32, #tpu.memory_space<vmem>>, vector<8x128xf32>,
    return
  }
  func.func @transform_0(%arg0: i32) -> (i32, i32) {
    %c0_i32 = arith.constant 0 : i32
    %c0_i32_0 = arith.constant 0 : i32
    return %arg0, %c0_i32 : i32, i32
  }
  func.func @transform_1(%arg0: i32) -> (i32, i32) {
    %c0_i32 = arith.constant 0 : i32
    %c0_i32_0 = arith.constant 0 : i32
    %c0_i32_1 = arith.constant 0 : i32
    return %c0_i32, %c0_i32_0 : i32, i32
  }
  func.func @transform_2(%arg0: i32) -> (i32, i32) {
    %c0_i32 = arith.constant 0 : i32
    %c0_i32_0 = arith.constant 0 : i32
    %c0_i32_1 = arith.constant 0 : i32
    return %c0_i32, %c0_i32_0 : i32, i32
  }
  func.func @transform_3(%arg0: i32) -> (i32, i32) {
    %c0_i32 = arith.constant 0 : i32
    %c0_i32_0 = arith.constant 0 : i32
    return %arg0, %c0_i32 : i32, i32
  }
  func.func @transform_4(%arg0: i32) -> (i32, i32) {
    %c0_i32 = arith.constant 0 : i32
    %c0_i32_0 = arith.constant 0 : i32
    return %arg0, %c0_i32 : i32, i32
  }
  func.func @transform_5(%arg0: i32) -> (i32, i32) {
    %c0_i32 = arith.constant 0 : i32
    %c0_i32_0 = arith.constant 0 : i32
    return %arg0, %c0_i32 : i32, i32
  }
}

</mosaic_0001>

<bundles_post_ra>
// kernel: tpu_custom_call.1
= control target key start
LH: loop header
LB: loop body
LE: loop exit
PB: predicated region body
PF: predicated region fallthrough
CT: control target
= control target key end

     0   :  { %11 = vsyncpa [#allocation3], 0  ;;  %s572_s0 = inlined_call_operand.hbm [shape: f32[8,128], index: 0, kind: input, shape index: {}]   ;;  %s573_s1 = inlined_call_operand.hbm [shape: f32[128,512], index: 1, kind: input, shape index: {}]   ;;  %s574_s2 = inlined_call_operand.hbm [shape: f32[1,512], index: 2, kind: input, shape index: {}]   ;;  %s575_s3 = inlined_call_operand.hbm [shape: f32[8,128], index: 3, kind: input, shape index: {}]   ;;  %s576_s4 = inlined_call_operand.hbm [shape: f32[8,128], index: 4, kind: output, shape index: {0}]   ;;  %s577_s5 = inlined_call_operand.hbm [shape: f32[8,128], index: 5, kind: output, shape index: {1}]  }
   0x1   :  { %12 = vsyncpa [#allocation6], 0 }
   0x2   :  { %13 = vsyncpa [#allocation9], 0 }
   0x3   :  { %14 = vsyncpa [#allocation4], 0 }
   0x4   :  { %15 = vsyncpa [#allocation12], 0  ;;  %s515_s18 = smov [#allocation5]  }
   0x5   :  { %s31_s19 = sshll.u32 %s515_s18, 4  ;;  %s32_s19 = int_to_ptr.vmem [resolvable:$true] %s31_s19 }
   0x6   :  { %s393_s20 = scalar_lea.vmem %s32_s19, 8192  ;;  %p398_p1 = scmp.lt.s32.totalorder %s32_s19, %s32_s19 }
   0x7   :  { %p394_p0 = scmp.ne.s32.totalorder %s32_s19, %s393_s20  ;;  %p399_p2 = scmp.lt.s32.totalorder %s393_s20, %s393_s20 }
   0x9   :  { %p400_p3 = por %p399_p2, %p398_p1 }
   0xb   :  { %p401_p4 = pnand %p400_p3, %p394_p0 }
   0xd   :  { %404 = shalt.err (!%p401_p4)
}
   0xe   :  { %s516_s21 = smov 512   ;;  %s517_s22 = smov 32  }
   0xf   :  { %37 = dma.hbm_to_vmem [thread:$0]  %s573_s1, 8192, %s32_s19, [#allocation6], %s516_s21, %s516_s21, %s517_s22  }
  0x10   :  { %s518_s25 = smov [#allocation2]   ;;  %s519_s27 = smov [#allocation7]  }
  0x11   :  { %s22_s26 = sshll.u32 %s518_s25, 4  ;;  %s44_s28 = sshll.u32 %s519_s27, 4  ;;  %s23_s26 = int_to_ptr.vmem [resolvable:$true] %s22_s26  ;;  %s45_s28 = int_to_ptr.vmem [resolvable:$true] %s44_s28 }
  0x12   :  { %s413_s29 = scalar_lea.vmem %s23_s26, 128  ;;  %p418_p6 = scmp.lt.s32.totalorder %s23_s26, %s23_s26 }
  0x13   :  { %p414_p5 = scmp.ne.s32.totalorder %s23_s26, %s413_s29  ;;  %p419_p7 = scmp.lt.s32.totalorder %s413_s29, %s413_s29 }
  0x15   :  { %p420_p8 = por %p419_p7, %p418_p6 }
  0x17   :  { %p421_p9 = pnand %p420_p8, %p414_p5 }
  0x19   :  { %424 = shalt.err (!%p421_p9)
}
  0x1a   :  { %25 = dma.hbm_to_vmem [thread:$0]  %s572_s0, 128, %s23_s26, [#allocation3]  }
  0x1b   :  { %s433_s7 = scalar_lea.vmem %s45_s28, 64  ;;  %p438_p11 = scmp.lt.s32.totalorder %s45_s28, %s45_s28 }
  0x1c   :  { %p434_p10 = scmp.ne.s32.totalorder %s45_s28, %s433_s7  ;;  %p439_p12 = scmp.lt.s32.totalorder %s433_s7, %s433_s7 }
  0x1e   :  { %p440_p13 = por %p439_p12, %p438_p11 }
  0x20   :  { %p441_p0 = pnand %p440_p13, %p434_p10 }
  0x22   :  { %444 = shalt.err (!%p441_p0)
}
  0x23   :  { %47 = dma.hbm_to_vmem [thread:$0]  %s574_s2, 64, %s45_s28, [#allocation6]  }
  0x24   :  { %s520_s9 = smov [#allocation8]  }
  0x25   :  { %s54_s10 = sshll.u32 %s520_s9, 4  ;;  %s55_s10 = int_to_ptr.vmem [resolvable:$true] %s54_s10 }
  0x26   :  { %s453_s11 = scalar_lea.vmem %s55_s10, 128  ;;  %p458_p2 = scmp.lt.s32.totalorder %s55_s10, %s55_s10 }
  0x27   :  { %p454_p1 = scmp.ne.s32.totalorder %s55_s10, %s453_s11  ;;  %p459_p3 = scmp.lt.s32.totalorder %s453_s11, %s453_s11 }
  0x29   :  { %p460_p4 = por %p459_p3, %p458_p2 }
  0x2b   :  { %p461_p5 = pnand %p460_p4, %p454_p1 }
  0x2d   :  { %464 = shalt.err (!%p461_p5)
}
  0x2e   :  { %57 = dma.hbm_to_vmem [thread:$0]  %s575_s3, 128, %s55_s10, [#allocation9]  }
  0x2f   :  { %505 = dma.done.wait [#allocation3], 128  }
  0x30   :  { %506 = vsyncadd [#allocation3], 4294967168 }
  0x31   :  { %507 = dma.done.wait [#allocation6], 8256  }
  0x32   :  { %508 = vsyncadd [#allocation6], 4294959040 }
  0x33   :  { %509 = dma.done.wait [#allocation9], 128  }
  0x34   :  { %510 = vsyncadd [#allocation9], 4294967168  ;;  %v521_v0 = vmov 0.0   ;;  %v132_v1 = vld [vmem:[#allocation5 + $0x1e8] sm:$0xff]  ;;  %v131_v2 = vld [vmem:[#allocation5 + $0x1e0] sm:$0xff]  ;;  %s522_s2 = smov [#allocation11]  }
  0x35   :  { %221 = vmatprep.mubr.f32.mxu0 %v521_v0  ;;  %292 = vmatprep.mubr.f32.mxu1 %v521_v0  ;;  %v128_v3 = vld [vmem:[#allocation5 + $0x1c8] sm:$0xff]  ;;  %v127_v4 = vld [vmem:[#allocation5 + $0x1c0] sm:$0xff]  ;;  %v134_v9 = vld [vmem:[#allocation5 + $0x1f8] sm:$0xff]  ;;  %s342_s3 = sshll.u32 %s522_s2, 4  ;;  %s343_s3 = int_to_ptr.vmem [resolvable:$true] %s342_s3 }
  0x36   :  { %157 = vmatprep.subr.mxu0 %v132_v1  ;;  %v124_v5 = vld [vmem:[#allocation5 + $0x1a8] sm:$0xff]  ;;  %v123_v6 = vld [vmem:[#allocation5 + $0x1a0] sm:$0xff]  ;;  %228 = vmatprep.subr.mxu1 %v134_v9  ;;  %v133_v11 = vld [vmem:[#allocation5 + $0x1f0] sm:$0xff]  ;;  %s465_s13 = scalar_lea.vmem %s343_s3, 128  ;;  %p470_p7 = scmp.lt.s32.totalorder %s343_s3, %s343_s3 }
  0x37   :  { %158 = vmatpush1.msra.mxu0 %v131_v2  ;;  %v120_v7 = vld [vmem:[#allocation5 + $0x188] sm:$0xff]  ;;  %v119_v8 = vld [vmem:[#allocation5 + $0x180] sm:$0xff]  ;;  %229 = vmatpush1.msra.mxu1 %v133_v11  ;;  %v130_v13 = vld [vmem:[#allocation5 + $0x1d8] sm:$0xff]  ;;  %v137_v2 = vlaneseq  ;;  %p466_p6 = scmp.ne.s32.totalorder %s343_s3, %s465_s13  ;;  %p471_p8 = scmp.lt.s32.totalorder %s465_s13, %s465_s13 }
  0x38   :  { %159 = vmatprep.subr.mxu0 %v128_v3  ;;  %v116_v10 = vld [vmem:[#allocation5 + $0x168] sm:$0xff]  ;;  %v115_v12 = vld [vmem:[#allocation5 + $0x160] sm:$0xff]  ;;  %v129_v14 = vld [vmem:[#allocation5 + $0x1d0] sm:$0xff]  ;;  %230 = vmatprep.subr.mxu1 %v130_v13 }
  0x39   :  { %160 = vmatpush1.msra.mxu0 %v127_v4  ;;  %v112_v15 = vld [vmem:[#allocation5 + $0x148] sm:$0xff]  ;;  %v126_v16 = vld [vmem:[#allocation5 + $0x1b8] sm:$0xff]  ;;  %v111_v17 = vld [vmem:[#allocation5 + $0x140] sm:$0xff]  ;;  %231 = vmatpush1.msra.mxu1 %v129_v14  ;;  %v138_v3 = vshrl.u32 %v137_v2, 7  ;;  %p472_p9 = por %p471_p8, %p470_p7 }
  0x3a   :  { %161 = vmatprep.subr.mxu0 %v124_v5  ;;  %v125_v18 = vld [vmem:[#allocation5 + $0x1b0] sm:$0xff]  ;;  %v122_v19 = vld [vmem:[#allocation5 + $0x198] sm:$0xff]  ;;  %v108_v20 = vld [vmem:[#allocation5 + $0x128] sm:$0xff]  ;;  %232 = vmatprep.subr.mxu1 %v126_v16 }
  0x3b   :  { %162 = vmatpush1.msra.mxu0 %v123_v6  ;;  %v121_v21 = vld [vmem:[#allocation5 + $0x190] sm:$0xff]  ;;  %v107_v22 = vld [vmem:[#allocation5 + $0x120] sm:$0xff]  ;;  %233 = vmatpush1.msra.mxu1 %v125_v18  ;;  %v118_v23 = vld [vmem:[#allocation5 + $0x178] sm:$0xff]  ;;  %v139_v4 = vsub.s32 0, %v138_v3  ;;  %v143_v6 = vsub.s32 1, %v138_v3  ;;  %v151_v14 = vsub.s32 3, %v138_v3  ;;  %p473_p10 = pnand %p472_p9, %p466_p6 }
  0x3c   :  { %163 = vmatprep.subr.mxu0 %v120_v7  ;;  %v104_v24 = vld [vmem:[#allocation5 + $0x108] sm:$0xff]  ;;  %234 = vmatprep.subr.mxu1 %v122_v19  ;;  %v117_v25 = vld [vmem:[#allocation5 + $0x170] sm:$0xff]  ;;  %v103_v26 = vld [vmem:[#allocation5 + $0x100] sm:$0xff] }
  0x3d   :  { %164 = vmatpush1.msra.mxu0 %v119_v8  ;;  %235 = vmatpush1.msra.mxu1 %v121_v21  ;;  %v114_v27 = vld [vmem:[#allocation5 + $0x158] sm:$0xff]  ;;  %v100_v28 = vld [vmem:[#allocation5 + $0xe8] sm:$0xff]  ;;  %v113_v29 = vld [vmem:[#allocation5 + $0x150] sm:$0xff] }
  0x3e   :  { %165 = vmatprep.subr.mxu0 %v116_v10  ;;  %236 = vmatprep.subr.mxu1 %v118_v23  ;;  %v99_v30 = vld [vmem:[#allocation5 + $0xe0] sm:$0xff]  ;;  %v110_v31 = vld [vmem:[#allocation5 + $0x138] sm:$0xff]  ;;  %v96_v32 = vld [vmem:[#allocation5 + $0xc8] sm:$0xff] }
  0x3f   :  { %166 = vmatpush1.msra.mxu0 %v115_v12  ;;  %237 = vmatpush1.msra.mxu1 %v117_v25  ;;  %v109_v33 = vld [vmem:[#allocation5 + $0x130] sm:$0xff]  ;;  %v95_v34 = vld [vmem:[#allocation5 + $0xc0] sm:$0xff]  ;;  %v106_v35 = vld [vmem:[#allocation5 + $0x118] sm:$0xff] }
  0x40   :  { %167 = vmatprep.subr.mxu0 %v112_v15  ;;  %238 = vmatprep.subr.mxu1 %v114_v27  ;;  %v92_v36 = vld [vmem:[#allocation5 + $0xa8] sm:$0xff]  ;;  %v105_v37 = vld [vmem:[#allocation5 + $0x110] sm:$0xff]  ;;  %v91_v38 = vld [vmem:[#allocation5 + $0xa0] sm:$0xff] }
  0x41   :  { %168 = vmatpush1.msra.mxu0 %v111_v17  ;;  %239 = vmatpush1.msra.mxu1 %v113_v29  ;;  %v102_v39 = vld [vmem:[#allocation5 + $0xf8] sm:$0xff]  ;;  %v88_v40 = vld [vmem:[#allocation5 + $0x88] sm:$0xff]  ;;  %v101_v41 = vld [vmem:[#allocation5 + $0xf0] sm:$0xff]  ;;  %v147_v17 = vsub.s32 2, %v138_v3 }
  0x42   :  { %169 = vmatprep.subr.mxu0 %v108_v20  ;;  %240 = vmatprep.subr.mxu1 %v110_v31  ;;  %v87_v42 = vld [vmem:[#allocation5 + $0x80] sm:$0xff]  ;;  %v98_v43 = vld [vmem:[#allocation5 + $0xd8] sm:$0xff]  ;;  %v84_v44 = vld [vmem:[#allocation5 + $0x68] sm:$0xff] }
  0x43   :  { %170 = vmatpush1.msra.mxu0 %v107_v22  ;;  %241 = vmatpush1.msra.mxu1 %v109_v33  ;;  %v97_v45 = vld [vmem:[#allocation5 + $0xd0] sm:$0xff]  ;;  %v83_v46 = vld [vmem:[#allocation5 + $0x60] sm:$0xff]  ;;  %v94_v47 = vld [vmem:[#allocation5 + $0xb8] sm:$0xff] }
  0x44   :  { %171 = vmatprep.subr.mxu0 %v104_v24  ;;  %242 = vmatprep.subr.mxu1 %v106_v35  ;;  %v80_v48 = vld [vmem:[#allocation5 + $0x48] sm:$0xff]  ;;  %v93_v49 = vld [vmem:[#allocation5 + $0xb0] sm:$0xff]  ;;  %v79_v50 = vld [vmem:[#allocation5 + $0x40] sm:$0xff] }
  0x45   :  { %172 = vmatpush1.msra.mxu0 %v103_v26  ;;  %243 = vmatpush1.msra.mxu1 %v105_v37  ;;  %v90_v51 = vld [vmem:[#allocation5 + $0x98] sm:$0xff]  ;;  %v76_v52 = vld [vmem:[#allocation5 + $0x28] sm:$0xff]  ;;  %v89_v53 = vld [vmem:[#allocation5 + $0x90] sm:$0xff] }
  0x46   :  { %173 = vmatprep.subr.mxu0 %v100_v28  ;;  %244 = vmatprep.subr.mxu1 %v102_v39  ;;  %v75_v54 = vld [vmem:[#allocation5 + $0x20] sm:$0xff]  ;;  %v86_v55 = vld [vmem:[#allocation5 + $0x78] sm:$0xff]  ;;  %v72_v56 = vld [vmem:[#allocation5 + $0x8] sm:$0xff] }
  0x47   :  { %174 = vmatpush1.msra.mxu0 %v99_v30  ;;  %245 = vmatpush1.msra.mxu1 %v101_v41  ;;  %v85_v57 = vld [vmem:[#allocation5 + $0x70] sm:$0xff]  ;;  %v71_v58 = vld [vmem:[#allocation5] sm:$0xff]  ;;  %v82_v59 = vld [vmem:[#allocation5 + $0x58] sm:$0xff] }
  0x48   :  { %175 = vmatprep.subr.mxu0 %v96_v32  ;;  %246 = vmatprep.subr.mxu1 %v98_v43  ;;  %v70_v60 = vld [vmem:[#allocation2] sm:$0xff]  ;;  %v81_v61 = vld [vmem:[#allocation5 + $0x50] sm:$0xff]  ;;  %v135_v5 = vld [vmem:[#allocation7] sm:$0xf] }
  0x49   :  { %176 = vmatpush1.msra.mxu0 %v95_v34  ;;  %247 = vmatpush1.msra.mxu1 %v97_v45  ;;  %v78_v62 = vld [vmem:[#allocation5 + $0x38] sm:$0xff]  ;;  %v77_v63 = vld [vmem:[#allocation5 + $0x30] sm:$0xff]  ;;  %v140_v7 = vrot.slane %v135_v5, %v139_v4  ;;  %v144_v8 = vrot.slane %v135_v5, %v143_v6  ;;  %v152_v18 = vrot.slane %v135_v5, %v151_v14  ;;  %v299_v31 = vld [vmem:[#allocation8] sm:$0xff] }
  0x4a   :  { %177 = vmatprep.subr.mxu0 %v92_v36  ;;  %248 = vmatprep.subr.mxu1 %v94_v47  ;;  %v74_v0 = vld [vmem:[#allocation5 + $0x18] sm:$0xff]  ;;  %v73_v1 = vld [vmem:[#allocation5 + $0x10] sm:$0xff]  ;;  %v148_v20 = vrot.slane %v135_v5, %v147_v17 }
  0x4b   :  { %178 = vmatpush1.msra.mxu0 %v91_v38  ;;  %249 = vmatpush1.msra.mxu1 %v93_v49 }
  0x4c   :  { %179 = vmatprep.subr.mxu0 %v88_v40  ;;  %250 = vmatprep.subr.mxu1 %v90_v51 }
  0x4d   :  { %180 = vmatpush1.msra.mxu0 %v87_v42  ;;  %251 = vmatpush1.msra.mxu1 %v89_v53 }
  0x4e   :  { %181 = vmatprep.subr.mxu0 %v84_v44  ;;  %252 = vmatprep.subr.mxu1 %v86_v55 }
  0x4f   :  { %182 = vmatpush1.msra.mxu0 %v83_v46  ;;  %253 = vmatpush1.msra.mxu1 %v85_v57 }
  0x50   :  { %183 = vmatprep.subr.mxu0 %v80_v48  ;;  %254 = vmatprep.subr.mxu1 %v82_v59 }
  0x51   :  { %184 = vmatpush1.msra.mxu0 %v79_v50  ;;  %255 = vmatpush1.msra.mxu1 %v81_v61 }
  0x52   :  { %185 = vmatprep.subr.mxu0 %v76_v52  ;;  %256 = vmatprep.subr.mxu1 %v78_v62 }
  0x53   :  { %186 = vmatpush1.msra.mxu0 %v75_v54  ;;  %257 = vmatpush1.msra.mxu1 %v77_v63 }
  0x54   :  { %187 = vmatprep.subr.mxu0 %v72_v56  ;;  %258 = vmatprep.subr.mxu1 %v74_v0 }
  0x55   :  { %188 = vmatpush1.msra.mxu0 %v71_v58  ;;  %259 = vmatpush1.msra.mxu1 %v73_v1 }
  0x56   :  { %222 = vmatmul.mubr.f32.vlgmr.msra.gmra.mxu0 %v70_v60  ;;  %293 = vmatmul.mubr.f32.vlgmr.msra.gmra.mxu1 %v70_v60 }
 0x116   :  { %v223_v9 = vpop.f32.mrf.mxu0  ;;  %v294_v16 = vpop.f32.mrf.mxu1 }
 0x117   :  { %v224_v10 = vadd.f32 %v223_v9, %v140_v7  ;;  %v295_v22 = vadd.f32 %v294_v16, %v148_v20 }
 0x118   :  { %v225_v11 = vpop.f32.mrf.mxu0  ;;  %v296_v19 = vpop.f32.mrf.mxu1 }
 0x119   :  { %v358_v12 = vmul.f32 -1.442695, %v224_v10  ;;  %v226_v13 = vadd.f32 %v225_v11, %v144_v8  ;;  %v297_v21 = vadd.f32 %v296_v19, %v152_v18 }
 0x11b   :  { %369 = vpow2.f32 %v358_v12  ;;  %v357_v15 = vmul.f32 -1.442695, %v226_v13  ;;  %v359_v23 = vmul.f32 -1.442695, %v297_v21 }
 0x11d   :  { %371 = vpow2.f32 %v357_v15 }
 0x11e   :  { %373 = vtanh.f32 %v295_v22 }
 0x11f   :  { %375 = vpow2.f32 %v359_v23 }
 0x128   :  { %v370_v24 = vpop.eup %369 }
 0x129   :  { %v310_v25 = vadd.f32 1.0, %v370_v24 }
 0x12a   :  { %v372_v26 = vpop.eup %371 }
 0x12b   :  { %377 = vrcp.f32 %v310_v25  ;;  %v303_v27 = vadd.f32 1.0, %v372_v26  ;;  %v374_v28 = vpop.eup %373 }
 0x12c   :  { %v376_v29 = vpop.eup %375 }
 0x12d   :  { %379 = vrcp.f32 %v303_v27  ;;  %v319_v33 = vadd.f32 1.0, %v376_v29 }
 0x12f   :  { %381 = vrcp.f32 %v319_v33 }
 0x138   :  { %v378_v30 = vpop.eup %377 }
 0x139   :  { %v314_v35 = vmul.f32 %v378_v30, %v374_v28 }
 0x13a   :  { %v380_v32 = vpop.eup %379 }
 0x13b   :  { %v306_v34 = vmul.f32 %v380_v32, %v299_v31 }
 0x13d   :  { %v315_v36 = vadd.f32 %v314_v35, %v306_v34 }
 0x13f   :  { %324 = vst [vmem:[#allocation11] sm:$0xff] %v315_v36  ;;  %383 = vtanh.f32 %v315_v36 }
 0x140   :  { %476 = shalt.err (!%p473_p10)
}
 0x141   :  { %345 = dma.vmem_to_hbm [thread:$0]  %s343_s3, 128, %s577_s5, [#allocation12]   ;;  %v382_v37 = vpop.eup %381 }
 0x142   :  { %s523_s16 = smov [#allocation10]  }
 0x143   :  { %s332_s17 = sshll.u32 %s523_s16, 4  ;;  %s333_s17 = int_to_ptr.vmem [resolvable:$true] %s332_s17 }
 0x144   :  { %s485_s18 = scalar_lea.vmem %s333_s17, 128  ;;  %p490_p12 = scmp.lt.s32.totalorder %s333_s17, %s333_s17 }
 0x145   :  { %p486_p11 = scmp.ne.s32.totalorder %s333_s17, %s485_s18  ;;  %p491_p13 = scmp.lt.s32.totalorder %s485_s18, %s485_s18 }
 0x147   :  { %p492_p0 = por %p491_p13, %p490_p12 }
 0x149   :  { %p493_p1 = pnand %p492_p0, %p486_p11 }
 0x14c   :  { %v384_v38 = vpop.eup %383 }
 0x14d   :  { %v323_v39 = vmul.f32 %v384_v38, %v382_v37 }
 0x14f   :  { %325 = vst [vmem:[#allocation10] sm:$0xff] %v323_v39 }
 0x150   :  { %496 = shalt.err (!%p493_p1)
}
 0x151   :  { %335 = dma.vmem_to_hbm [thread:$0]  %s333_s17, 128, %s576_s4, [#allocation4]  }
 0x152   :  { %511 = dma.done.wait [#allocation4], 128  }
 0x153   :  { %512 = vsyncadd [#allocation4], 4294967168 }
 0x154   :  { %513 = dma.done.wait [#allocation12], 128  }
 0x155   :  { %514 = vsyncadd [#allocation12], 4294967168 }
 0x156   :  { %352 = vsyncpa [#allocation3], 1 }
 0x157   :  { %353 = vsyncpa [#allocation6], 1 }
 0x158   :  { %354 = vsyncpa [#allocation9], 1 }
 0x159   :  { %355 = vsyncpa [#allocation4], 1 }
 0x15a   :  { %356 = vsyncpa [#allocation12], 1 }

</bundles_post_ra>
